<compile_context>
chip_gen: v7x
topology: tpu7x:2x2x1
jax: 0.10.0
libtpu: 0.0.40
codegen_flags: <defaults>
</compile_context>

<pallas_src>
import functools

import jax
import jax.numpy as jnp
from jax.experimental import pallas as pl
from jax.experimental.pallas import tpu as pltpu


def _round_up(x, m):
    return (x + m - 1) // m * m


def _conv_bn_relu_kernel(x_ref, w_ref, scale_ref, shift_ref, o_ref, *,
                         taps, lc, win, single_chunk, apply_relu):
    """One grid step = one batch element x one lane-chunk of the flat output.

    x_ref:     (1, Cin, Lp)    bf16 flattened padded image (+ zero tail)
    w_ref:     (T, Cout, Cin)  bf16 per-tap weight matrices
    scale_ref: (Cout, 1) f32   folded BN gamma / sqrt(var + eps)
    shift_ref: (Cout, 1) f32   folded BN / bias shift
    o_ref:     (1, Cout, lc)   one lane-chunk of the stride-1 flat output
    """
    if single_chunk:
        base = 0                                            # fully static path
    else:
        base = pl.multiple_of(pl.program_id(1) * lc, 128)   # 128-aligned start

    # One aligned window load per chunk; every tap is a static slice of it.
    xw = x_ref[0, :, pl.ds(base, win)]                       # (Cin, win)

    # bf16 x bf16 matmuls with f32 accumulation; acc starts from the first tap.
    acc = jnp.dot(w_ref[0], xw[:, taps[0]:taps[0] + lc],
                  preferred_element_type=jnp.float32)
    for t in range(1, len(taps)):
        off = taps[t]
        acc = acc + jnp.dot(w_ref[t], xw[:, off:off + lc],
                            preferred_element_type=jnp.float32)

    y = acc * scale_ref[...] + shift_ref[...]                # fused BN + bias
    if apply_relu:
        y = jnp.maximum(y, 0.0)
    o_ref[0] = y.astype(o_ref.dtype)


def spatial_attention_conv(x, weight, bias=None, bn_gamma=None, bn_beta=None,
                           bn_mean=None, bn_var=None, *, stride=1, padding=0,
                           dilation=1, groups=1, relu=True, bn=True, eps=1e-5,
                           compute_dtype=jnp.bfloat16):
    """Forward pass of SpatialAttentionConv: Conv2d -> BatchNorm2d -> ReLU.

    x: (B, Cin, H, W) f32, weight: (Cout, Cin, KH, KW) f32 (PyTorch layout).
    """
    B, Cin, H, W = x.shape
    Cout, Cin_g, KH, KW = weight.shape
    if groups != 1:
        raise NotImplementedError("groups != 1 not supported")  # TODO(synk)
    assert Cin_g == Cin

    Hp, Wp = H + 2 * padding, W + 2 * padding
    Ho_full = Hp - dilation * (KH - 1)          # stride-1 output rows
    Wo_full = Wp - dilation * (KW - 1)          # stride-1 output cols
    assert Ho_full >= 1 and Wo_full >= 1, "kernel larger than padded input"

    L_acc = Ho_full * Wp                        # valid flat (stride-1) length
    max_off = dilation * ((KH - 1) * Wp + (KW - 1))
    halo = _round_up(max_off, 128) if max_off else 0

    # Lane-chunk size: multiple of 128, large enough to amortize per-step
    # overhead, small enough that the f32 accumulator (Cout, lc) stays in
    # vregs (~64 KiB budget) and blocks double-buffer comfortably in scoped
    # VMEM on v5e/v6e/v7x.
    acc_budget = 64 * 1024
    lc = max(128, min(2048, (acc_budget // (4 * Cout)) // 128 * 128))
    lc = min(lc, _round_up(L_acc, 128))
    L_pad = _round_up(L_acc, lc)                # padded flat output width
    n_chunks = L_pad // lc
    win = lc + halo                             # per-chunk input window
    Lp = L_pad + halo                           # flat padded input length

    # VMEM budget (double-buffered x slab + out chunk + weights).
    item = jnp.dtype(compute_dtype).itemsize
    vmem_est = 2 * (Cin * Lp * item + Cout * lc * 4) + KH * KW * Cout * Cin * item
    if vmem_est > 24 * 1024 * 1024:
        # TODO(synk): tile the input-channel / row axes for very large images.
        raise ValueError(f"image too large: blocks need ~{vmem_est} bytes VMEM")

    # Host-side layout prep (plain XLA ops).
    x_pad = jnp.pad(x, ((0, 0), (0, 0), (padding, padding), (padding, padding)))
    x_flat = x_pad.reshape(B, Cin, Hp * Wp)
    x_flat = jnp.pad(x_flat, ((0, 0), (0, 0), (0, Lp - Hp * Wp)))
    x_flat = x_flat.astype(compute_dtype)

    # (KH*KW, Cout, Cin): one matmul operand per tap (bf16).
    w_taps = jnp.transpose(weight, (2, 3, 0, 1)).reshape(KH * KW, Cout, Cin)
    w_taps = w_taps.astype(compute_dtype)
    taps = tuple(kh * dilation * Wp + kw * dilation
                 for kh in range(KH) for kw in range(KW))

    # Fold conv bias + inference-mode BatchNorm into per-channel scale/shift.
    if bn:
        s = bn_gamma / jnp.sqrt(bn_var + eps)
        sh = bn_beta - bn_mean * s
        if bias is not None:
            sh = sh + bias * s
    else:
        s = jnp.ones((Cout,), jnp.float32)
        sh = bias if bias is not None else jnp.zeros((Cout,), jnp.float32)
    scale = s.reshape(Cout, 1).astype(jnp.float32)
    shift = sh.reshape(Cout, 1).astype(jnp.float32)

    kernel = functools.partial(
        _conv_bn_relu_kernel, taps=taps, lc=lc, win=win,
        single_chunk=(n_chunks == 1), apply_relu=relu)

    y_full = pl.pallas_call(
        kernel,
        out_shape=jax.ShapeDtypeStruct((B, Cout, L_pad), x.dtype),
        grid_spec=pltpu.PrefetchScalarGridSpec(
            num_scalar_prefetch=0,
            grid=(B, n_chunks),     # chunk axis innermost: x slab stays resident
            in_specs=[
                pl.BlockSpec((1, Cin, Lp), lambda b, l: (b, 0, 0)),         # x
                pl.BlockSpec((KH * KW, Cout, Cin), lambda b, l: (0, 0, 0)), # w
                pl.BlockSpec((Cout, 1), lambda b, l: (0, 0)),               # scale
                pl.BlockSpec((Cout, 1), lambda b, l: (0, 0)),               # shift
            ],
            out_specs=pl.BlockSpec((1, Cout, lc), lambda b, l: (b, 0, l)),
        ),
        compiler_params=pltpu.CompilerParams(
            dimension_semantics=("parallel", "parallel"),
            vmem_limit_bytes=32 * 1024 * 1024),
    )(x_flat, w_taps, scale, shift)

    # Drop padded / wrap-around columns; apply stride by subsampling.
    y = y_full[:, :, :L_acc].reshape(B, Cout, Ho_full, Wp)
    y = y[:, :, ::stride, :Wo_full]
    y = y[:, :, :, ::stride]
    return y


def spatial_attention_conv_reference(x, weight, bias, bn_gamma, bn_beta,
                                     bn_mean, bn_var, *, stride=1, padding=0,
                                     dilation=1, groups=1, relu=True, bn=True,
                                     eps=1e-5):
    """Pure-JAX reference mirroring the PyTorch module (BN in eval mode)."""
    y = jax.lax.conv_general_dilated(
        x, weight,
        window_strides=(stride, stride),
        padding=[(padding, padding), (padding, padding)],
        rhs_dilation=(dilation, dilation),
        dimension_numbers=("NCHW", "OIHW", "NCHW"),
        feature_group_count=groups,
        precision=jax.lax.Precision.HIGHEST)
    if bias is not None:
        y = y + bias[None, :, None, None]
    if bn:
        y = (y - bn_mean[None, :, None, None]) / jnp.sqrt(
            bn_var[None, :, None, None] + eps)
        y = y * bn_gamma[None, :, None, None] + bn_beta[None, :, None, None]
    if relu:
        y = jnp.maximum(y, 0.0)
    return y


if __name__ == "__main__":
    # SpatialAttentionConv(in_planes=4, out_planes=8, kernel_size=3, padding=1)
    B, Cin, H, W = 2, 4, 16, 16
    Cout, K = 8, 3
    stride, padding, dilation = 1, 1, 1

    key = jax.random.PRNGKey(0)
    kx, kw, kg, kb, km, kv = jax.random.split(key, 6)

    x = jax.random.normal(kx, (B, Cin, H, W), dtype=jnp.float32)
    weight = jax.random.normal(kw, (Cout, Cin, K, K), dtype=jnp.float32) * 0.1
    bn_gamma = 1.0 + 0.1 * jax.random.normal(kg, (Cout,), dtype=jnp.float32)
    bn_beta = 0.1 * jax.random.normal(kb, (Cout,), dtype=jnp.float32)
    bn_mean = 0.1 * jax.random.normal(km, (Cout,), dtype=jnp.float32)
    bn_var = jnp.abs(1.0 + 0.1 * jax.random.normal(kv, (Cout,), dtype=jnp.float32))

    out = spatial_attention_conv(
        x, weight, None, bn_gamma, bn_beta, bn_mean, bn_var,
        stride=stride, padding=padding, dilation=dilation,
        groups=1, relu=True, bn=True)
    out = jax.block_until_ready(out)

    # Reference on bf16-rounded inputs: the kernel multiplies bf16 operands
    # exactly and accumulates in f32, so this isolates input quantization
    # (a deliberate perf choice) from any kernel bug.
    x_q = x.astype(jnp.bfloat16).astype(jnp.float32)
    w_q = weight.astype(jnp.bfloat16).astype(jnp.float32)
    ref = spatial_attention_conv_reference(
        x_q, w_q, None, bn_gamma, bn_beta, bn_mean, bn_var,
        stride=stride, padding=padding, dilation=dilation,
        groups=1, relu=True, bn=True)

    assert out.shape == (B, Cout, H, W), out.shape
    max_err = float(jnp.max(jnp.abs(out - ref)))
    assert jnp.allclose(out, ref, atol=5e-3, rtol=5e-3), max_err

    print("KERNEL_OK")
</pallas_src>

<mosaic_0001>
module attributes {stable_mosaic.version = 11 : i64} {
  func.func @_conv_bn_relu_kernel(%arg0: i32, %arg1: i32, %arg2: memref<1x4x512xbf16, #tpu.memory_space<vmem>>, %arg3: memref<9x8x4xbf16, #tpu.memory_space<vmem>>, %arg4: memref<8x1xf32, #tpu.memory_space<vmem>>, %arg5: memref<8x1xf32, #tpu.memory_space<vmem>>, %arg6: memref<1x8x384xf32, #tpu.memory_space<vmem>>) attributes {dimension_semantics = [#tpu.dimension_semantics<parallel>, #tpu.dimension_semantics<parallel>], iteration_bounds = array<i64: 2, 1>, scalar_prefetch = 0 : i64, scratch_operands = 0 : i64, tpu.core_type = #tpu.core_type<tc>, window_params = [{transform_indices = @transform_0, window_bounds = array<i64: 1, 4, 512>}, {pipeline_mode = #tpu.pipeline_mode<synchronous>, transform_indices = @transform_1, window_bounds = array<i64: 9, 8, 4>}, {pipeline_mode = #tpu.pipeline_mode<synchronous>, transform_indices = @transform_2, window_bounds = array<i64: 8, 1>}, {pipeline_mode = #tpu.pipeline_mode<synchronous>, transform_indices = @transform_3, window_bounds = array<i64: 8, 1>}, {transform_indices = @transform_4, window_bounds = array<i64: 1, 8, 384>}]} {
    %c0 = arith.constant 0 : index
    %c0_0 = arith.constant 0 : index
    %c0_1 = arith.constant 0 : index
    %0 = vector.load %arg2[%c0, %c0_0, %c0_1] : memref<1x4x512xbf16, #tpu.memory_space<vmem>>, vector<1x4x512xbf16>
    %1 = vector.shape_cast %0 : vector<1x4x512xbf16> to vector<4x512xbf16>
    %c0_2 = arith.constant 0 : index
    %c0_3 = arith.constant 0 : index
    %c0_4 = arith.constant 0 : index
    %2 = vector.load %arg3[%c0_2, %c0_3, %c0_4] : memref<9x8x4xbf16, #tpu.memory_space<vmem>>, vector<1x8x4xbf16>
    %3 = vector.shape_cast %2 : vector<1x8x4xbf16> to vector<8x4xbf16>
    %4 = vector.extract_strided_slice %1 {offsets = [0, 0], sizes = [4, 384], strides = [1, 1]} : vector<4x512xbf16> to vector<4x384xbf16>
    %cst = arith.constant dense<0.000000e+00> : vector<8x384xf32>
    %5 = tpu.matmul %3, %4, %cst {dimension_numbers = #tpu.dot_dimension_numbers<[1], [0], [0], [1], [0, 0, 1, 1], [], []>} : vector<8x4xbf16>, vector<4x384xbf16>, vector<8x384xf32> -> vector<8x384xf32>
    %c1 = arith.constant 1 : index
    %c0_5 = arith.constant 0 : index
    %c0_6 = arith.constant 0 : index
    %6 = vector.load %arg3[%c1, %c0_5, %c0_6] : memref<9x8x4xbf16, #tpu.memory_space<vmem>>, vector<1x8x4xbf16>
    %7 = vector.shape_cast %6 : vector<1x8x4xbf16> to vector<8x4xbf16>
    %8 = vector.extract_strided_slice %1 {offsets = [0, 1], sizes = [4, 384], strides = [1, 1]} : vector<4x512xbf16> to vector<4x384xbf16>
    %cst_7 = arith.constant dense<0.000000e+00> : vector<8x384xf32>
    %9 = tpu.matmul %7, %8, %cst_7 {dimension_numbers = #tpu.dot_dimension_numbers<[1], [0], [0], [1], [0, 0, 1, 1], [], []>} : vector<8x4xbf16>, vector<4x384xbf16>, vector<8x384xf32> -> vector<8x384xf32>
    %10 = arith.addf %5, %9 : vector<8x384xf32>
    %c2 = arith.constant 2 : index
    %c0_8 = arith.constant 0 : index
    %c0_9 = arith.constant 0 : index
    %11 = vector.load %arg3[%c2, %c0_8, %c0_9] : memref<9x8x4xbf16, #tpu.memory_space<vmem>>, vector<1x8x4xbf16>
    %12 = vector.shape_cast %11 : vector<1x8x4xbf16> to vector<8x4xbf16>
    %13 = vector.extract_strided_slice %1 {offsets = [0, 2], sizes = [4, 384], strides = [1, 1]} : vector<4x512xbf16> to vector<4x384xbf16>
    %cst_10 = arith.constant dense<0.000000e+00> : vector<8x384xf32>
    %14 = tpu.matmul %12, %13, %cst_10 {dimension_numbers = #tpu.dot_dimension_numbers<[1], [0], [0], [1], [0, 0, 1, 1], [], []>} : vector<8x4xbf16>, vector<4x384xbf16>, vector<8x384xf32> -> vector<8x384xf32>
    %15 = arith.addf %10, %14 : vector<8x384xf32>
    %c3 = arith.constant 3 : index
    %c0_11 = arith.constant 0 : index
    %c0_12 = arith.constant 0 : index
    %16 = vector.load %arg3[%c3, %c0_11, %c0_12] : memref<9x8x4xbf16, #tpu.memory_space<vmem>>, vector<1x8x4xbf16>
    %17 = vector.shape_cast %16 : vector<1x8x4xbf16> to vector<8x4xbf16>
    %18 = vector.extract_strided_slice %1 {offsets = [0, 18], sizes = [4, 384], strides = [1, 1]} : vector<4x512xbf16> to vector<4x384xbf16>
    %cst_13 = arith.constant dense<0.000000e+00> : vector<8x384xf32>
    %19 = tpu.matmul %17, %18, %cst_13 {dimension_numbers = #tpu.dot_dimension_numbers<[1], [0], [0], [1], [0, 0, 1, 1], [], []>} : vector<8x4xbf16>, vector<4x384xbf16>, vector<8x384xf32> -> vector<8x384xf32>
    %20 = arith.addf %15, %19 : vector<8x384xf32>
    %c4 = arith.constant 4 : index
    %c0_14 = arith.constant 0 : index
    %c0_15 = arith.constant 0 : index
    %21 = vector.load %arg3[%c4, %c0_14, %c0_15] : memref<9x8x4xbf16, #tpu.memory_space<vmem>>, vector<1x8x4xbf16>
    %22 = vector.shape_cast %21 : vector<1x8x4xbf16> to vector<8x4xbf16>
    %23 = vector.extract_strided_slice %1 {offsets = [0, 19], sizes = [4, 384], strides = [1, 1]} : vector<4x512xbf16> to vector<4x384xbf16>
    %cst_16 = arith.constant dense<0.000000e+00> : vector<8x384xf32>
    %24 = tpu.matmul %22, %23, %cst_16 {dimension_numbers = #tpu.dot_dimension_numbers<[1], [0], [0], [1], [0, 0, 1, 1], [], []>} : vector<8x4xbf16>, vector<4x384xbf16>, vector<8x384xf32> -> vector<8x384xf32>
    %25 = arith.addf %20, %24 : vector<8x384xf32>
    %c5 = arith.constant 5 : index
    %c0_17 = arith.constant 0 : index
    %c0_18 = arith.constant 0 : index
    %26 = vector.load %arg3[%c5, %c0_17, %c0_18] : memref<9x8x4xbf16, #tpu.memory_space<vmem>>, vector<1x8x4xbf16>
    %27 = vector.shape_cast %26 : vector<1x8x4xbf16> to vector<8x4xbf16>
    %28 = vector.extract_strided_slice %1 {offsets = [0, 20], sizes = [4, 384], strides = [1, 1]} : vector<4x512xbf16> to vector<4x384xbf16>
    %cst_19 = arith.constant dense<0.000000e+00> : vector<8x384xf32>
    %29 = tpu.matmul %27, %28, %cst_19 {dimension_numbers = #tpu.dot_dimension_numbers<[1], [0], [0], [1], [0, 0, 1, 1], [], []>} : vector<8x4xbf16>, vector<4x384xbf16>, vector<8x384xf32> -> vector<8x384xf32>
    %30 = arith.addf %25, %29 : vector<8x384xf32>
    %c6 = arith.constant 6 : index
    %c0_20 = arith.constant 0 : index
    %c0_21 = arith.constant 0 : index
    %31 = vector.load %arg3[%c6, %c0_20, %c0_21] : memref<9x8x4xbf16, #tpu.memory_space<vmem>>, vector<1x8x4xbf16>
    %32 = vector.shape_cast %31 : vector<1x8x4xbf16> to vector<8x4xbf16>
    %33 = vector.extract_strided_slice %1 {offsets = [0, 36], sizes = [4, 384], strides = [1, 1]} : vector<4x512xbf16> to vector<4x384xbf16>
    %cst_22 = arith.constant dense<0.000000e+00> : vector<8x384xf32>
    %34 = tpu.matmul %32, %33, %cst_22 {dimension_numbers = #tpu.dot_dimension_numbers<[1], [0], [0], [1], [0, 0, 1, 1], [], []>} : vector<8x4xbf16>, vector<4x384xbf16>, vector<8x384xf32> -> vector<8x384xf32>
    %35 = arith.addf %30, %34 : vector<8x384xf32>
    %c7 = arith.constant 7 : index
    %c0_23 = arith.constant 0 : index
    %c0_24 = arith.constant 0 : index
    %36 = vector.load %arg3[%c7, %c0_23, %c0_24] : memref<9x8x4xbf16, #tpu.memory_space<vmem>>, vector<1x8x4xbf16>
    %37 = vector.shape_cast %36 : vector<1x8x4xbf16> to vector<8x4xbf16>
    %38 = vector.extract_strided_slice %1 {offsets = [0, 37], sizes = [4, 384], strides = [1, 1]} : vector<4x512xbf16> to vector<4x384xbf16>
    %cst_25 = arith.constant dense<0.000000e+00> : vector<8x384xf32>
    %39 = tpu.matmul %37, %38, %cst_25 {dimension_numbers = #tpu.dot_dimension_numbers<[1], [0], [0], [1], [0, 0, 1, 1], [], []>} : vector<8x4xbf16>, vector<4x384xbf16>, vector<8x384xf32> -> vector<8x384xf32>
    %40 = arith.addf %35, %39 : vector<8x384xf32>
    %c8 = arith.constant 8 : index
    %c0_26 = arith.constant 0 : index
    %c0_27 = arith.constant 0 : index
    %41 = vector.load %arg3[%c8, %c0_26, %c0_27] : memref<9x8x4xbf16, #tpu.memory_space<vmem>>, vector<1x8x4xbf16>
    %42 = vector.shape_cast %41 : vector<1x8x4xbf16> to vector<8x4xbf16>
    %43 = vector.extract_strided_slice %1 {offsets = [0, 38], sizes = [4, 384], strides = [1, 1]} : vector<4x512xbf16> to vector<4x384xbf16>
    %cst_28 = arith.constant dense<0.000000e+00> : vector<8x384xf32>
    %44 = tpu.matmul %42, %43, %cst_28 {dimension_numbers = #tpu.dot_dimension_numbers<[1], [0], [0], [1], [0, 0, 1, 1], [], []>} : vector<8x4xbf16>, vector<4x384xbf16>, vector<8x384xf32> -> vector<8x384xf32>
    %45 = arith.addf %40, %44 : vector<8x384xf32>
    %c0_29 = arith.constant 0 : index
    %c0_30 = arith.constant 0 : index
    %46 = vector.load %arg4[%c0_29, %c0_30] : memref<8x1xf32, #tpu.memory_space<vmem>>, vector<8x1xf32>
    %47 = vector.broadcast %46 : vector<8x1xf32> to vector<8x384xf32>
    %48 = arith.mulf %45, %47 : vector<8x384xf32>
    %c0_31 = arith.constant 0 : index
    %c0_32 = arith.constant 0 : index
    %49 = vector.load %arg5[%c0_31, %c0_32] : memref<8x1xf32, #tpu.memory_space<vmem>>, vector<8x1xf32>
    %50 = vector.broadcast %49 : vector<8x1xf32> to vector<8x384xf32>
    %51 = arith.addf %48, %50 : vector<8x384xf32>
    %cst_33 = arith.constant 0.000000e+00 : f32
    %52 = vector.broadcast %cst_33 : f32 to vector<8x384xf32>
    %53 = arith.maximumf %51, %52 : vector<8x384xf32>
    %c0_34 = arith.constant 0 : index
    %c0_35 = arith.constant 0 : index
    %c0_36 = arith.constant 0 : index
    %54 = vector.load %arg6[%c0_34, %c0_35, %c0_36] : memref<1x8x384xf32, #tpu.memory_space<vmem>>, vector<1x8x384xf32>
    %55 = vector.shape_cast %54 : vector<1x8x384xf32> to vector<8x384xf32>
    %56 = vector.shape_cast %53 : vector<8x384xf32> to vector<1x8x384xf32>
    tpu.vector_store %arg6[%c0_34, %c0_35, %c0_36], %56 {strides = array<i32>} : memref<1x8x384xf32, #tpu.memory_space<vmem>>, vector<1x8x384xf32>,
    return
  }
  func.func @transform_0(%arg0: i32, %arg1: i32) -> (i32, i32, i32) {
    %c0_i32 = arith.constant 0 : i32
    %c0_i32_0 = arith.constant 0 : i32
    %c0_i32_1 = arith.constant 0 : i32
    return %arg0, %c0_i32, %c0_i32_0 : i32, i32, i32
  }
  func.func @transform_1(%arg0: i32, %arg1: i32) -> (i32, i32, i32) {
    %c0_i32 = arith.constant 0 : i32
    %c0_i32_0 = arith.constant 0 : i32
    %c0_i32_1 = arith.constant 0 : i32
    %c0_i32_2 = arith.constant 0 : i32
    return %c0_i32, %c0_i32_0, %c0_i32_1 : i32, i32, i32
  }
  func.func @transform_2(%arg0: i32, %arg1: i32) -> (i32, i32) {
    %c0_i32 = arith.constant 0 : i32
    %c0_i32_0 = arith.constant 0 : i32
    %c0_i32_1 = arith.constant 0 : i32
    return %c0_i32, %c0_i32_0 : i32, i32
  }
  func.func @transform_3(%arg0: i32, %arg1: i32) -> (i32, i32) {
    %c0_i32 = arith.constant 0 : i32
    %c0_i32_0 = arith.constant 0 : i32
    %c0_i32_1 = arith.constant 0 : i32
    return %c0_i32, %c0_i32_0 : i32, i32
  }
  func.func @transform_4(%arg0: i32, %arg1: i32) -> (i32, i32, i32) {
    %c0_i32 = arith.constant 0 : i32
    %c0_i32_0 = arith.constant 0 : i32
    return %arg0, %c0_i32, %arg1 : i32, i32, i32
  }
}

</mosaic_0001>

<bundles_post_ra>
// kernel: tpu_custom_call.1
= control target key start
LH: loop header
LB: loop body
LE: loop exit
PB: predicated region body
PF: predicated region fallthrough
CT: control target
= control target key end

     0   :  { %9 = vsyncpa [#allocation3], 0  ;;  %s1962_s0 = inlined_call_operand.vmem [shape: bf16[2,4,512], index: 0, kind: input, shape index: {}]   ;;  %s1963_s1 = inlined_call_operand.vmem [shape: bf16[9,8,4], index: 1, kind: input, shape index: {}]   ;;  %s1964_s2 = inlined_call_operand.vmem [shape: f32[8,1], index: 2, kind: input, shape index: {}]   ;;  %s1965_s3 = inlined_call_operand.vmem [shape: f32[8,1], index: 3, kind: input, shape index: {}]   ;;  %s1966_s4 = inlined_call_operand.hbm [shape: f32[2,8,384], index: 4, kind: output, shape index: {}]  }
   0x1   :  { %11 = vsyncpa [#allocation3 + $0x1], 0  ;;  %s1687_s15 = smov 0   ;;  %s1689_s16 = smov 0  }
   0x2   :  { %s1691_s17 = smov 0   ;;  %s1693_s18 = smov 0  }
   0x3   :  { %s1695_s19 = smov 0   ;;  %s1697_s20 = smov 0  }
   0x4 LB: > { %s1315_s21 = sadd.s32 4294967295, %s1647_s20   ;;  %s1316_s22 = sadd.s32 4294967294, %s1647_s20   ;;  %s1647_s20 = sphi %s1697_s20, %s17_s20   ;;  %s1643_s19 = sphi %s1695_s19, %s1973_s19   ;;  %s1639_s18 = sphi %s1693_s18, %s1972_s18   ;;  %s1635_s17 = sphi %s1691_s17, %s1971_s17   ;;  %s1631_s16 = sphi %s1689_s16, %s1970_s16   ;;  %s1627_s15 = sphi %s1687_s15, %s1969_s15  }
   0x5   : > { %s29_s23 = sadd.s32 1, %s1643_s19  ;;  %s127_s24 = sadd.s32 1, %s1635_s17 }
   0x6   : > { %p31_p0 = scmp.ge.s32.totalorder %s29_s23, 2  ;;  %p137_p1 = scmp.ne.s32.totalorder %s1635_s17, %s1631_s16 }
   0x7   : > { %p138_p2 = scmp.eq.s32.totalorder %s1315_s21, 1  ;;  %p143_p3 = scmp.ne.s32.totalorder %s1631_s16, %s1627_s15 }
   0x8   : > { %s1975_s23 = smov (%p31_p0, %s29_s23), 0  ;;  %p144_p5 = scmp.eq.s32.totalorder %s1316_s22, 1 }
   0x9   : > { %p1727_p4 = por %p138_p2, %p137_p1  ;;  %s122_s26 = ssub.s32 %s1643_s19, %s1975_s23 }
   0xa   : > { %p1319_p6 = scmp.ge.s32.totalorder %s1647_s20, 1  ;;  %p125_p7 = scmp.eq.s32.totalorder %s122_s26, 0 }
   0xb   : > { %p1734_p8 = por %p144_p5, %p143_p3  ;;  %p179_p9 = scmp.lt.s32.totalorder %s1647_s20, 3 }
   0xc   : > { %s1740_s28 = scalar_select %p125_p7, %s1635_s17, %s127_s24  }
   0xd   : > { %p180_p10 = pnand %p1319_p6, %p179_p9 }
   0xe   : > { %p205_p11 = scmp.lt.s32.totalorder (!%p180_p10), %s1639_s18, 1  ;;  %v221_v0 = vlaneseq (!%p180_p10)  ;;  %v1649_v1 = vmov (!%p180_p10), 1983009808   ;;  %v1650_v5 = vmov (!%p180_p10), 0.0   ;;  %v1651_v6 = vmov (!%p180_p10), 0   ;;  %s1653_s8 = smov (!%p180_p10), 127  }
   0xf   : > { %183 = sbr.rel (%p180_p10) target bundleno = 483 (0x1e3), region = 36  ;;  %v219_v2 = vunpack.c.l.s4 (!%p180_p10), %v1649_v1  ;;  %1379 = vmatprep.subr.bf16.mxu1 (!%p180_p10), %v1650_v5  ;;  %292 = vmatprep.mubr.bf16.mxu0 (!%p180_p10), %v1651_v6  ;;  %vm1652_vm0 = vmmov (!%p180_p10), 0   ;;  %s1654_s9 = smov (!%p180_p10), 126   ;;  %v1204_v14 = vld [vmem:[%s1964_s2] sm:$0xff] (!%p180_p10)  ;;  %vm242_vm1 = vcmask (!%p180_p10), 1039360   ;;  %vm250_vm2 = vcmask (!%p180_p10), 1041408  }
  0x10   : > { %v222_v3 = vshrl.u32 (!%p180_p10), %v221_v0, 7  ;;  %1566 = vset.pattern.permute.xlu0 (!%p180_p10), %v1651_v6  ;;  %1567 = vset.pattern.permute.xlu1 (!%p180_p10), %v1651_v6  ;;  %s1655_s10 = smov (!%p180_p10), 110   ;;  %s1656_s11 = smov (!%p180_p10), 109   ;;  %v1213_v15 = vld [vmem:[%s1965_s3] sm:$0xff] (!%p180_p10)  ;;  %vm246_vm3 = vcmask (!%p180_p10), 31744   ;;  %vm444_vm4 = vcmask (!%p180_p10), 1031168  }
  0x11   : > { %v220_v4 = vunpack.c.0.s8 (!%p180_p10), %v219_v2  ;;  %1381 = vmatprep.mubr.msk.bf16.mxu1 (!%p180_p10), %vm1652_vm0, %v1650_v5  ;;  %s1657_s12 = smov (!%p180_p10), 108   ;;  %s1658_s13 = smov (!%p180_p10), 92   ;;  %v1322_v24 = vld [vmem:[%s1963_s1 + $0x4] sm:$0xf] (!%p180_p10)  ;;  %vm554_vm5 = vcmask (!%p180_p10), 900096   ;;  %vm664_vm6 = vcmask (!%p180_p10), 891904  }
  0x12   : > { %s1659_s14 = smov (!%p180_p10), 91   ;;  %s1660_s21 = smov (!%p180_p10), 90   ;;  %v213_v37 = vld [vmem:[%s1963_s1] sm:$0xf] (!%p180_p10)  ;;  %v1329_v48 = vld [vmem:[%s1963_s1 + $0x8] sm:$0xf] (!%p180_p10) }
  0x13   : > { %v223_v7 = vsub.s32 (!%p180_p10), %v220_v4, %v222_v3  ;;  %vm774_vm7 = vcmask (!%p180_p10), 883712   ;;  %v1333_v58 = vld [vmem:[%s1963_s1 + $0xc] sm:$0xf] (!%p180_p10)  ;;  %vm884_vm8 = vcmask (!%p180_p10), 752640   ;;  %v1337_v4 = vld [vmem:[%s1963_s1 + $0x10] sm:$0xf] (!%p180_p10) }
  0x14   : > { %vm994_vm9 = vcmask (!%p180_p10), 744448   ;;  %vm1104_vm10 = vcmask (!%p180_p10), 736256   ;;  %s202_s6 = sand.u32 (!%p180_p10), 1, %s1631_s16  }
  0x16   : > { %s206_s29 = scalar_select %p205_p11, %s1639_s18, 1 }
  0x18   : > { %s1360_s30 = sshll.u32 %s206_s29, 3 }
  0x19   : > { %s209_s7 = scalar_lea.vmem %s1962_s0, %s1360_s30 }
  0x1a   : > { %v212_v8 = vld [vmem:[%s209_s7] sm:$0xff]  ;;  %s1497_s7 = smul.u32 24, %s202_s6 }
  0x1b   : > { %v1753_v9 = vrot.slane %v212_v8, %v223_v7  ;;  %v217_v10 = vcombine.high %v212_v8, %v212_v8 }
  0x1d   : > { %234 = vrot.lane.b32.xlu0 %v1753_v9, %s1653_s8  ;;  %v1756_v11 = vrot.slane %v217_v10, %v223_v7  ;;  %v232_v12 = vcombine.high %v1753_v9, %v1753_v9  ;;  %v345_v26 = vsel %vm250_vm2, %v1753_v9, 0 }
  0x1f   : > { %238 = vrot.lane.b32.xlu1 %v1756_v11, %s1653_s8  ;;  %v233_v13 = vcombine.high %v1756_v11, %v1756_v11  ;;  %v351_v28 = vsel %vm250_vm2, %v1756_v11, 0 }
  0x21   : > { %236 = vrot.lane.b32.xlu0 %v232_v12, %s1653_s8 }
  0x23   : > { %240 = vrot.lane.b32.xlu1 %v233_v13, %s1653_s8  ;;  %s1498_s8 = smul.u32 384, %s1639_s18  ;;  %s1229_s18 = scalar_lea.sflag [#allocation3], %s202_s6 }
  0x25   : > { %436 = vrot.lane.b32.xlu0 %v1753_v9, %s1654_s9 }
  0x27   : > { %438 = vrot.lane.b32.xlu1 %v232_v12, %s1654_s9 }
  0x29   : > { %440 = vrot.lane.b32.xlu0 %v1756_v11, %s1654_s9 }
  0x2b   : > { %442 = vrot.lane.b32.xlu1 %v233_v13, %s1654_s9  ;;  %s204_s9 = scalar_lea.vmem [#allocation2], %s1497_s7 }
  0x2d   : > { %546 = vrot.lane.b32.xlu0 %v1753_v9, %s1655_s10 }
  0x2f   : > { %548 = vrot.lane.b32.xlu1 %v232_v12, %s1655_s10 }
  0x31   : > { %550 = vrot.lane.b32.xlu0 %v1756_v11, %s1655_s10 }
  0x33   : > { %552 = vrot.lane.b32.xlu1 %v233_v13, %s1655_s10  ;;  %s1245_s10 = sshll.u32 %s204_s9, 4  ;;  %s1917_s10 = int_to_ptr.vmem [resolvable:$true] %s1245_s10 }
  0x35   : > { %656 = vrot.lane.b32.xlu0 %v1753_v9, %s1656_s11 }
  0x37   : > { %658 = vrot.lane.b32.xlu1 %v232_v12, %s1656_s11 }
  0x39   : > { %660 = vrot.lane.b32.xlu0 %v1756_v11, %s1656_s11 }
  0x3b   : > { %662 = vrot.lane.b32.xlu1 %v233_v13, %s1656_s11 }
  0x3d   : > { %766 = vrot.lane.b32.xlu0 %v1753_v9, %s1657_s12 }
  0x3f   : > { %768 = vrot.lane.b32.xlu1 %v232_v12, %s1657_s12 }
  0x41   : > { %770 = vrot.lane.b32.xlu0 %v1756_v11, %s1657_s12 }
  0x43   : > { %772 = vrot.lane.b32.xlu1 %v233_v13, %s1657_s12 }
  0x45   : > { %876 = vrot.lane.b32.xlu0 %v1753_v9, %s1658_s13 }
  0x47   : > { %878 = vrot.lane.b32.xlu1 %v232_v12, %s1658_s13 }
  0x49   : > { %880 = vrot.lane.b32.xlu0 %v1756_v11, %s1658_s13 }
  0x4b   : > { %882 = vrot.lane.b32.xlu1 %v233_v13, %s1658_s13  ;;  %s1915_s13 = scalar_lea.hbm %s1966_s4, %s1498_s8 }
  0x4d   : > { %986 = vrot.lane.b32.xlu0 %v1753_v9, %s1659_s14 }
  0x4f   : > { %988 = vrot.lane.b32.xlu1 %v232_v12, %s1659_s14 }
  0x51   : > { %990 = vrot.lane.b32.xlu0 %v1756_v11, %s1659_s14 }
  0x53   : > { %992 = vrot.lane.b32.xlu1 %v233_v13, %s1659_s14  ;;  %s1569_s14 = scalar_lea.vmem %s1917_s10, 384 }
  0x54   : > { %p1570_p12 = scmp.ne.s32.totalorder %s1917_s10, %s1569_s14 }
  0x55   : > { %1096 = vrot.lane.b32.xlu0 %v1753_v9, %s1660_s21 }
  0x56   : > { %p1571_p13 = pnand %p1570_p12, %p1727_p4 }
  0x57   : > { %1098 = vrot.lane.b32.xlu1 %v232_v12, %s1660_s21 }
  0x58   : > { %p1572_p0 = pneg %p1571_p13 }
  0x59   : > { %1100 = vrot.lane.b32.xlu0 %v1756_v11, %s1660_s21 }
  0x5b   : > { %1102 = vrot.lane.b32.xlu1 %v233_v13, %s1660_s21  ;;  %s1661_s21 = smov [#allocation2]  }
  0x5c   : > { %s1573_s22 = sshll.u32 %s1661_s21, 4  ;;  %s1574_s22 = int_to_ptr.vmem [resolvable:$false] %s1573_s22 }
  0x5d   : > { %1207 = vperm.xlu0 %1566, %v1204_v14   ;;  %s1575_s24 = scalar_lea.vmem %s1574_s22, 768  ;;  %p1576_p1 = scmp.lt.s32.totalorder %s1917_s10, %s1574_s22 }
  0x5e   : > { %p1577_p2 = scmp.lt.s32.totalorder %s1575_s24, %s1569_s14 }
  0x5f   : > { %1216 = vperm.xlu1 %1567, %v1213_v15  }
  0x60   : > { %p1578_p3 = por %p1577_p2, %p1576_p1 }
  0x62   : > { %p1579_p5 = pnand %p1578_p3, %p1572_p0 }
  0x8f   : > { %v235_v16 = vpop.permute.xlu0 %234 }
  0x91   : > { %v239_v17 = vpop.permute.xlu1 %238 }
  0x93   : > { %v237_v18 = vpop.permute.xlu0 %236 }
  0x94   : > { %v244_v19 = vsel %vm242_vm1, %v237_v18, %v239_v17  ;;  %v243_v20 = vsel %vm242_vm1, %v235_v16, %v237_v18  ;;  %v1341_v16 = vld [vmem:[%s1963_s1 + $0x14] sm:$0xf] }
  0x95   : > { %1323 = vmatprep.subr.msk.bf16.mxu0 %vm250_vm2, %v244_v19  ;;  %v241_v21 = vpop.permute.xlu1 %240  ;;  %v252_v22 = vsel %vm250_vm2, %v243_v20, 0 }
  0x96   : > { %261 = vmatpush1.bf16.msra.mxu0 %v252_v22  ;;  %v245_v23 = vsel %vm242_vm1, %v239_v17, %v241_v21 }
  0x97   : > { %v258_v25 = vsel %vm250_vm2, %v245_v23, 0  ;;  %1326 = vmatprep.subr.msk.bf16.mxu0 %vm250_vm2, %v232_v12  ;;  %v437_v27 = vpop.permute.xlu0 %436 }
  0x98   : > { %1380 = vmatpush3.bf16.msra.mxu1 %v258_v25 }
  0x99   : > { %1324 = vmatmul.mubr.msk.bf16.vlgmr.msra.gmra.mrb[0].mxu0 %vm246_vm3, %v1322_v24  ;;  %1385 = vmatprep.subr.bf16.mxu1 %v1650_v5  ;;  %v439_v29 = vpop.permute.xlu1 %438 }
  0x9a   : > { %354 = vmatpush1.bf16.msra.mxu0 %v345_v26  ;;  %385 = vmatprep.mubr.bf16.mxu0 %v1651_v6  ;;  %v445_v34 = vsel %vm444_vm4, %v437_v27, %v439_v29  ;;  %v1345_v26 = vld [vmem:[%s1963_s1 + $0x18] sm:$0xf] }
  0x9b   : > { %1382 = vmatmul.mubr.msk.bf16.vlgmr.msra.gmra.mrb[0].mxu1 %vm246_vm3, %v1322_v24  ;;  %v441_v30 = vpop.permute.xlu0 %440  ;;  %v452_v38 = vsel %vm250_vm2, %v445_v34, 0 }
  0x9c   : > { %1386 = vmatpush3.bf16.msra.mxu1 %v351_v28  ;;  %v446_v31 = vsel %vm444_vm4, %v439_v29, %v441_v30  ;;  %1387 = vmatprep.mubr.msk.bf16.mxu1 %vm1652_vm0, %v1650_v5 }
  0x9d   : > { %1330 = vmatprep.subr.msk.bf16.mxu0 %vm250_vm2, %v446_v31  ;;  %v443_v32 = vpop.permute.xlu1 %442  ;;  %1391 = vmatprep.subr.bf16.mxu1 %v1650_v5 }
  0x9e   : > { %v447_v36 = vsel %vm444_vm4, %v441_v30, %v443_v32 }
  0x9f   : > { %v547_v33 = vpop.permute.xlu0 %546  ;;  %v458_v41 = vsel %vm250_vm2, %v447_v36, 0  ;;  %v1353_v36 = vld [vmem:[%s1963_s1 + $0x20] sm:$0xf] }
  0xa1   : > { %v549_v35 = vpop.permute.xlu1 %548 }
  0xa2   : > { %v555_v44 = vsel %vm554_vm5, %v547_v33, %v549_v35  ;;  %v1349_v33 = vld [vmem:[%s1963_s1 + $0x1c] sm:$0xf] }
  0xa3   : > { %v551_v39 = vpop.permute.xlu0 %550  ;;  %v562_v49 = vsel %vm250_vm2, %v555_v44, 0 }
  0xa4   : > { %v556_v40 = vsel %vm554_vm5, %v549_v35, %v551_v39 }
  0xa5   : > { %1327 = vmatmul.mubr.msk.bf16.vlgmr.msra.gmra.mrb[0].mxu0 %vm246_vm3, %v213_v37  ;;  %v553_v43 = vpop.permute.xlu1 %552 }
  0xa6   : > { %461 = vmatpush1.bf16.msra.mxu0 %v452_v38  ;;  %492 = vmatprep.mubr.bf16.mxu0 %v1651_v6  ;;  %v557_v47 = vsel %vm554_vm5, %v551_v39, %v553_v43 }
  0xa7   : > { %1388 = vmatmul.mubr.msk.bf16.vlgmr.msra.gmra.mrb[0].mxu1 %vm246_vm3, %v213_v37  ;;  %1334 = vmatprep.subr.msk.bf16.mxu0 %vm250_vm2, %v556_v40  ;;  %v657_v42 = vpop.permute.xlu0 %656  ;;  %v568_v51 = vsel %vm250_vm2, %v557_v47, 0 }
  0xa8   : > { %1392 = vmatpush3.bf16.msra.mxu1 %v458_v41  ;;  %1393 = vmatprep.mubr.msk.bf16.mxu1 %vm1652_vm0, %v1650_v5 }
  0xa9   : > { %1397 = vmatprep.subr.bf16.mxu1 %v1650_v5  ;;  %v659_v45 = vpop.permute.xlu1 %658 }
  0xaa   : > { %v665_v54 = vsel %vm664_vm6, %v657_v42, %v659_v45 }
  0xab   : > { %v661_v46 = vpop.permute.xlu0 %660  ;;  %v672_v59 = vsel %vm250_vm2, %v665_v54, 0 }
  0xac   : > { %v666_v50 = vsel %vm664_vm6, %v659_v45, %v661_v46 }
  0xad   : > { %v663_v53 = vpop.permute.xlu1 %662 }
  0xae   : > { %v667_v57 = vsel %vm664_vm6, %v661_v46, %v663_v53 }
  0xaf   : > { %v767_v52 = vpop.permute.xlu0 %766  ;;  %v678_v61 = vsel %vm250_vm2, %v667_v57, 0 }
  0xb1   : > { %1331 = vmatmul.mubr.msk.bf16.vlgmr.msra.gmra.mrb[0].mxu0 %vm246_vm3, %v1329_v48  ;;  %v769_v55 = vpop.permute.xlu1 %768 }
  0xb2   : > { %571 = vmatpush1.bf16.msra.mxu0 %v562_v49  ;;  %602 = vmatprep.mubr.bf16.mxu0 %v1651_v6  ;;  %v775_v0 = vsel %vm774_vm7, %v767_v52, %v769_v55 }
  0xb3   : > { %1394 = vmatmul.mubr.msk.bf16.vlgmr.msra.gmra.mrb[0].mxu1 %vm246_vm3, %v1329_v48  ;;  %1338 = vmatprep.subr.msk.bf16.mxu0 %vm250_vm2, %v666_v50  ;;  %v771_v56 = vpop.permute.xlu0 %770  ;;  %v782_v7 = vsel %vm250_vm2, %v775_v0, 0 }
  0xb4   : > { %1398 = vmatpush3.bf16.msra.mxu1 %v568_v51  ;;  %1399 = vmatprep.mubr.msk.bf16.mxu1 %vm1652_vm0, %v1650_v5  ;;  %v776_v60 = vsel %vm774_vm7, %v769_v55, %v771_v56 }
  0xb5   : > { %1403 = vmatprep.subr.bf16.mxu1 %v1650_v5  ;;  %v773_v63 = vpop.permute.xlu1 %772 }
  0xb6   : > { %v777_v3 = vsel %vm774_vm7, %v771_v56, %v773_v63 }
  0xb7   : > { %v877_v62 = vpop.permute.xlu0 %876  ;;  %v788_v9 = vsel %vm250_vm2, %v777_v3, 0 }
  0xb9   : > { %v879_v1 = vpop.permute.xlu1 %878 }
  0xba   : > { %v885_v12 = vsel %vm884_vm8, %v877_v62, %v879_v1 }
  0xbb   : > { %v881_v2 = vpop.permute.xlu0 %880  ;;  %v892_v17 = vsel %vm250_vm2, %v885_v12, 0 }
  0xbc   : > { %v886_v8 = vsel %vm884_vm8, %v879_v1, %v881_v2 }
  0xbd   : > { %1335 = vmatmul.mubr.msk.bf16.vlgmr.msra.gmra.mrb[0].mxu0 %vm246_vm3, %v1333_v58  ;;  %v883_v11 = vpop.permute.xlu1 %882 }
  0xbe   : > { %681 = vmatpush1.bf16.msra.mxu0 %v672_v59  ;;  %712 = vmatprep.mubr.bf16.mxu0 %v1651_v6  ;;  %v887_v15 = vsel %vm884_vm8, %v881_v2, %v883_v11 }
  0xbf   : > { %1400 = vmatmul.mubr.msk.bf16.vlgmr.msra.gmra.mrb[0].mxu1 %vm246_vm3, %v1333_v58  ;;  %1342 = vmatprep.subr.msk.bf16.mxu0 %vm250_vm2, %v776_v60  ;;  %v987_v10 = vpop.permute.xlu0 %986  ;;  %v898_v19 = vsel %vm250_vm2, %v887_v15, 0 }
  0xc0   : > { %1404 = vmatpush3.bf16.msra.mxu1 %v678_v61  ;;  %1405 = vmatprep.mubr.msk.bf16.mxu1 %vm1652_vm0, %v1650_v5 }
  0xc1   : > { %1409 = vmatprep.subr.bf16.mxu1 %v1650_v5  ;;  %v989_v13 = vpop.permute.xlu1 %988 }
  0xc2   : > { %v995_v22 = vsel %vm994_vm9, %v987_v10, %v989_v13 }
  0xc3   : > { %v991_v14 = vpop.permute.xlu0 %990  ;;  %v1002_v27 = vsel %vm250_vm2, %v995_v22, 0 }
  0xc4   : > { %v996_v18 = vsel %vm994_vm9, %v989_v13, %v991_v14 }
  0xc5   : > { %v993_v21 = vpop.permute.xlu1 %992 }
  0xc6   : > { %v997_v25 = vsel %vm994_vm9, %v991_v14, %v993_v21 }
  0xc7   : > { %v1097_v20 = vpop.permute.xlu0 %1096  ;;  %v1008_v29 = vsel %vm250_vm2, %v997_v25, 0 }
  0xc9   : > { %1339 = vmatmul.mubr.msk.bf16.vlgmr.msra.gmra.mrb[0].mxu0 %vm246_vm3, %v1337_v4  ;;  %v1099_v23 = vpop.permute.xlu1 %1098 }
  0xca   : > { %791 = vmatpush1.bf16.msra.mxu0 %v782_v7  ;;  %822 = vmatprep.mubr.bf16.mxu0 %v1651_v6  ;;  %v1105_v31 = vsel %vm1104_vm10, %v1097_v20, %v1099_v23 }
  0xcb   : > { %1406 = vmatmul.mubr.msk.bf16.vlgmr.msra.gmra.mrb[0].mxu1 %vm246_vm3, %v1337_v4  ;;  %1346 = vmatprep.subr.msk.bf16.mxu0 %vm250_vm2, %v886_v8  ;;  %v1101_v24 = vpop.permute.xlu0 %1100  ;;  %v1112_v34 = vsel %vm250_vm2, %v1105_v31, 0 }
  0xcc   : > { %1410 = vmatpush3.bf16.msra.mxu1 %v788_v9  ;;  %1411 = vmatprep.mubr.msk.bf16.mxu1 %vm1652_vm0, %v1650_v5  ;;  %v1106_v28 = vsel %vm1104_vm10, %v1099_v23, %v1101_v24 }
  0xcd   : > { %1415 = vmatprep.subr.bf16.mxu1 %v1650_v5  ;;  %v1103_v30 = vpop.permute.xlu1 %1102 }
  0xce   : > { %v1107_v32 = vsel %vm1104_vm10, %v1101_v24, %v1103_v30 }
  0xcf   : > { %v1118_v35 = vsel %vm250_vm2, %v1107_v32, 0 }
  0xd5   : > { %1343 = vmatmul.mubr.msk.bf16.vlgmr.msra.gmra.mrb[0].mxu0 %vm246_vm3, %v1341_v16 }
  0xd6   : > { %901 = vmatpush1.bf16.msra.mxu0 %v892_v17  ;;  %932 = vmatprep.mubr.bf16.mxu0 %v1651_v6 }
  0xd7   : > { %1412 = vmatmul.mubr.msk.bf16.vlgmr.msra.gmra.mrb[0].mxu1 %vm246_vm3, %v1341_v16  ;;  %1350 = vmatprep.subr.msk.bf16.mxu0 %vm250_vm2, %v996_v18 }
  0xd8   : > { %1416 = vmatpush3.bf16.msra.mxu1 %v898_v19  ;;  %1417 = vmatprep.mubr.msk.bf16.mxu1 %vm1652_vm0, %v1650_v5 }
  0xd9   : > { %1421 = vmatprep.subr.bf16.mxu1 %v1650_v5 }
  0xdc   : > { %v1208_v37 = vpop.permute.xlu0 %1207 }
  0xe1   : > { %1347 = vmatmul.mubr.msk.bf16.vlgmr.msra.gmra.mrb[0].mxu0 %vm246_vm3, %v1345_v26 }
  0xe2   : > { %1011 = vmatpush1.bf16.msra.mxu0 %v1002_v27  ;;  %1042 = vmatprep.mubr.bf16.mxu0 %v1651_v6 }
  0xe3   : > { %1418 = vmatmul.mubr.msk.bf16.vlgmr.msra.gmra.mrb[0].mxu1 %vm246_vm3, %v1345_v26  ;;  %1354 = vmatprep.subr.msk.bf16.mxu0 %vm250_vm2, %v1106_v28 }
  0xe4   : > { %1422 = vmatpush3.bf16.msra.mxu1 %v1008_v29  ;;  %1423 = vmatprep.mubr.msk.bf16.mxu1 %vm1652_vm0, %v1650_v5 }
  0xe5   : > { %1427 = vmatprep.subr.bf16.mxu1 %v1650_v5 }
  0xed   : > { %1351 = vmatmul.mubr.msk.bf16.vlgmr.msra.gmra.mrb[0].mxu0 %vm246_vm3, %v1349_v33 }
  0xee   : > { %1121 = vmatpush1.bf16.msra.mxu0 %v1112_v34  ;;  %1152 = vmatprep.mubr.bf16.mxu0 %v1651_v6  ;;  %v1217_v6 = vpop.permute.xlu1 %1216 }
  0xef   : > { %1424 = vmatmul.mubr.msk.bf16.vlgmr.msra.gmra.mrb[0].mxu1 %vm246_vm3, %v1349_v33 }
  0xf0   : > { %1428 = vmatpush3.bf16.msra.mxu1 %v1118_v35  ;;  %1429 = vmatprep.mubr.msk.bf16.mxu1 %vm1652_vm0, %v1650_v5 }
  0xf9   : > { %1355 = vmatmul.mubr.msk.bf16.vlgmr.msra.gmra.mrb[0].mxu0 %vm246_vm3, %v1353_v36 }
  0xfb   : > { %1430 = vmatmul.mubr.msk.bf16.vlgmr.msra.gmra.mrb[0].mxu1 %vm246_vm3, %v1353_v36 }
 0x1cc   : > { %v1154_v38 = vpop.f32.mrb[0].mxu0 }
 0x1cd   : > { %v1210_v39 = vmul.f32 %v1208_v37, %v1154_v38  ;;  %v1156_v40 = vpop.f32.mrb[1].mxu0 }
 0x1ce   : > { %v1211_v41 = vmul.f32 %v1208_v37, %v1156_v40  ;;  %v1158_v42 = vpop.f32.mrb[2].mxu0  ;;  %v1195_v43 = vpop.f32.mrb[0].mxu1 }
 0x1cf   : > { %v1212_v5 = vmul.f32 %v1208_v37, %v1195_v43  ;;  %v1219_v44 = vadd.f32 %v1217_v6, %v1210_v39  ;;  %v1159_v45 = vpop.f32.mrb[3].mxu0  ;;  %v1431_v46 = vpop.f32.mrb[1].mxu1 }
 0x1d0   : > { %v1220_v47 = vadd.f32 %v1217_v6, %v1211_v41  ;;  %v1198_v48 = vpop.f32.mrb[2].mxu1 }
 0x1d1   : > { %v1221_v49 = vadd.f32 %v1217_v6, %v1212_v5  ;;  %v1222_v50 = vmax.f32 %v1219_v44, 0.0  ;;  %v1432_v51 = vpop.f32.mrb[3].mxu1 }
 0x1d2   : > { %v1223_v52 = vmax.f32 %v1220_v47, 0.0 }
 0x1d3   : > { %v1224_v53 = vmax.f32 %v1221_v49, 0.0  ;;  %1225 = vst [vmem:[%s204_s9] sm:$0xff] %v1222_v50 }
 0x1d4   : > { %1226 = vst [vmem:[%s204_s9 + $0x8] sm:$0xff] %v1223_v52 }
 0x1d5   : > { %1227 = vst [vmem:[%s204_s9 + $0x10] sm:$0xff] %v1224_v53 }
 0x1d6   : > { %1582 = shalt.err (!%p1579_p5)
}
 0x1d7   : > { %s1583_s26 = scalar_lea.hbm %s1915_s13, 384  ;;  %s1587_s5 = scalar_lea.hbm %s1966_s4, 768 }
 0x1d8   : > { %p1584_p6 = scmp.ne.s32.totalorder %s1915_s13, %s1583_s26  ;;  %p1588_p10 = scmp.lt.u32.totalorder %s1915_s13, %s1966_s4 }
 0x1d9   : > { %p1589_p11 = scmp.lt.u32.totalorder %s1587_s5, %s1583_s26  ;;  %p1591_p13 = scmp.lt.u32.totalorder %s1583_s26, %s1915_s13 }
 0x1da   : > { %p1585_p7 = pnand %p1584_p6, %p1727_p4 }
 0x1db   : > { %p1590_p12 = por %p1589_p11, %p1588_p10 }
 0x1dc   : > { %p1586_p9 = pneg %p1585_p7 }
 0x1dd   : > { %p1592_p0 = por %p1591_p13, %p1590_p12 }
 0x1df   : > { %p1593_p1 = pnand %p1592_p0, %p1586_p9 }
 0x1e1   : > { %1596 = shalt.err (!%p1593_p1)
}
 0x1e2   : > { %1499 = dma.vmem_to_hbm [thread:$0]  (%p1727_p4), %s1917_s10, 384, %s1915_s13, %s1229_s18  }
 0x1e3 PF: > { %p1505_p2 = scmp.ge.s32.totalorder %s1647_s20, 2  ;;  %s1257_s8 = sand.u32 1, %s1627_s15  }
 0x1e4   : > { %s1258_s9 = scalar_lea.sflag [#allocation3], %s1257_s8 }
 0x1e5   : > { %p1502_p3 = pnand %p1505_p2, %p1734_p8 }
 0x1e7   : > { %1622 = dma.done.wait (!%p1502_p3), %s1258_s9, 384  }
 0x1e8   : > { %1624 = vsyncadd (!%p1502_p3), %s1258_s9, 4294966912  ;;  %s17_s20 = sadd.s32 1, %s1647_s20   ;;  %s1969_s15 = smov %s1631_s16 }
 0x1e9   : > { %p14_p5 = scmp.ge.s32.totalorder %s17_s20, 4   ;;  %s1970_s16 = smov %s1635_s17 }
 0x1ea   : > { %s1971_s17 = smov %s1740_s28  ;;  %s1972_s18 = smov %s1643_s19 }
 0x1eb   : > { %s1973_s19 = smov %s1975_s23  ;;  %16 = sbr.rel (!%p14_p5) target bundleno = 4 (0x4), region = 79 }
 0x1f2   :  { %1263 = vsyncpa [#allocation3], 1 }
 0x1f3   :  { %1265 = vsyncpa [#allocation3 + $0x1], 1 }

</bundles_post_ra>
